<compile_context>
chip_gen: v7x
topology: tpu7x:2x2x1
jax: 0.10.0
libtpu: 0.0.40
codegen_flags: <defaults>
</compile_context>

<pallas_src>
import jax
import jax.numpy as jnp
from jax.experimental import pallas as pl
from jax.experimental.pallas import tpu as pltpu


_LANE = 128
_ROW_ALIGN = 16                   # bf16 sublane packing for intermediates
_VMEM_TILE_BUDGET = 40 << 20      # headroom under v7x's 64 MiB physical VMEM


def _round_up(x, m):
    return (x + m - 1) // m * m


def _lane_pad(n):
    return _round_up(max(int(n), 1), _LANE)


def _make_mlp_kernel(n_layers):
    """Kernel factory: fused n_layers-deep MLP on one batch tile."""

    def kernel(x_ref, *refs):
        (*param_refs, o_ref) = refs

        def silu_to_bf16(z_f32):
            # SiLU = z * sigmoid(z). exp and approximate reciprocal both land
            # on the EUP slot (keeps transcendentals off the VALU on v5e).
            e = jnp.exp(-z_f32)
            return (z_f32 * pl.reciprocal(1.0 + e, approx=True)).astype(jnp.bfloat16)

        # In-kernel cast: x arrives f32 from HBM, bf16 feeds the MXU.
        h = x_ref[...].astype(jnp.bfloat16)
        for li in range(n_layers):
            w_ref = param_refs[2 * li]
            b_ref = param_refs[2 * li + 1]
            z = (jnp.dot(h, w_ref[...], preferred_element_type=jnp.float32)
                 + b_ref[...])
            if li + 1 < n_layers:
                h = silu_to_bf16(z)
            else:
                # Final layer: unpadded f32 store (exactly the useful bytes).
                o_ref[...] = z.astype(o_ref.dtype)

    return kernel


def _estimate_vmem_bytes(block_batch, in_ch, out_ch, widths):
    """Real live set: double-buffered x/out tiles + widest layer boundary's
    intermediates (bf16 input act + f32 pre-act + bf16 post-act)."""
    per_row = 2 * _lane_pad(in_ch) * 4          # f32 x tile, double-buffered
    per_row += 2 * _lane_pad(out_ch) * 4        # f32 out tile, double-buffered
    live = 0
    prev = in_ch
    for w in widths:
        live = max(live, _lane_pad(prev) * 2 + _lane_pad(w) * (4 + 2))
        prev = w
    per_row += live
    return block_batch * per_row


def _param_vmem_bytes(params):
    total = 0
    for (w, _b) in params:
        fan_in, fan_out = w.shape
        total += _round_up(fan_in, 16) * _lane_pad(fan_out) * 2   # bf16 weight
        total += 8 * _lane_pad(fan_out) * 4                        # f32 bias row
    return total


def mlp_forward(x, params, *, block_batch=None):
    """x: (B, in_channels) f32.  params: list of (W, b), W (in, out), b (1, out)."""
    B, in_ch = x.shape
    widths = [int(w.shape[1]) for (w, _) in params]
    out_ch = widths[-1]
    n_layers = len(params)

    B_r = _round_up(B, _ROW_ALIGN)
    param_vmem = _param_vmem_bytes(params)

    if block_batch is None:
        block_batch = _ROW_ALIGN
        for cand in (8192, 4096, 2048, 1024, 512, 256, 128, 64, 32, 16):
            if (_estimate_vmem_bytes(cand, in_ch, out_ch, widths) + param_vmem
                    <= _VMEM_TILE_BUDGET):
                block_batch = cand
                break
        block_batch = min(block_batch, B_r)
        # v7x has 2 TensorCores: if the batch is big enough to split, make
        # sure the grid has >= 2 steps so ("parallel",) can shard across them.
        if B_r >= 512 and B_r <= block_batch:
            block_batch = max(256, _round_up(-(-B_r // 2), _ROW_ALIGN))
    block_batch = max(_ROW_ALIGN, _round_up(int(block_batch), _ROW_ALIGN))

    B_pad = _round_up(B, block_batch)
    grid = (B_pad // block_batch,)

    # Only pad rows when needed; x stays f32 (cast happens inside the kernel).
    xp = x if B_pad == B else jnp.pad(x, ((0, B_pad - B), (0, 0)))

    # x tiled along batch; weights/biases are full-array, single-buffered
    # blocks because their index_map is constant across the grid.
    single_buf = pl.Buffered(buffer_count=1)
    in_specs = [pl.BlockSpec((block_batch, in_ch), lambda i: (i, 0))]
    flat_params = []
    param_hbm_bytes = 0
    for (w, b) in params:
        wq = w.astype(jnp.bfloat16)
        bq = b.astype(jnp.float32).reshape(1, -1)
        in_specs.append(pl.BlockSpec(wq.shape, lambda i: (0, 0),
                                     pipeline_mode=single_buf))
        in_specs.append(pl.BlockSpec(bq.shape, lambda i: (0, 0),
                                     pipeline_mode=single_buf))
        flat_params += [wq, bq]
        param_hbm_bytes += wq.size * 2 + bq.size * 4

    out_specs = pl.BlockSpec((block_batch, out_ch), lambda i: (i, 0))

    footprint = _estimate_vmem_bytes(block_batch, in_ch, out_ch, widths) + param_vmem
    vmem_limit = int(min(max(footprint + footprint // 4 + (2 << 20), 16 << 20),
                         56 << 20))

    flops = 0
    prev = in_ch
    for d in widths:
        flops += 2 * B_pad * prev * d
        prev = d
    cost = pl.CostEstimate(
        flops=flops,
        transcendentals=B_pad * sum(widths[:-1]),   # one exp per hidden activation
        bytes_accessed=B_pad * in_ch * 4 + param_hbm_bytes + B_pad * out_ch * 4,
    )

    # NOTE: with K,N <= 64 the matmuls under-fill the 256-wide MXU on v6e/v7x;
    # remaining tuning is M-per-step and keeping SiLU on EUP (see review item 8).
    out = pl.pallas_call(
        _make_mlp_kernel(n_layers),
        out_shape=jax.ShapeDtypeStruct((B_pad, out_ch), x.dtype),
        grid_spec=pltpu.PrefetchScalarGridSpec(
            num_scalar_prefetch=0,
            grid=grid,
            in_specs=in_specs,
            out_specs=out_specs,
        ),
        compiler_params=pltpu.CompilerParams(
            dimension_semantics=("parallel",),   # shards batch across TCs on v7x
            vmem_limit_bytes=vmem_limit,
        ),
        cost_estimate=cost,
    )(xp, *flat_params)

    return out if B_pad == B else out[:B]


def init_mlp_params(key, in_channels, out_channels, hidden_channels=64, n_blocks=5):
    """Deterministic init mirroring nn.Linear default (uniform +-1/sqrt(fan_in)).

    Weights returned already transposed to (in_features, out_features);
    biases shaped (1, out_features) for clean 2-D VMEM layout.
    """
    dims = []
    ch = in_channels
    for _ in range(n_blocks - 1):
        dims.append((ch, hidden_channels))
        ch = hidden_channels
    dims.append((ch, out_channels))

    params = []
    for (fan_in, fan_out) in dims:
        key, kw, kb = jax.random.split(key, 3)
        bound = 1.0 / jnp.sqrt(jnp.float32(fan_in))
        w = jax.random.uniform(kw, (fan_in, fan_out), jnp.float32, -bound, bound)
        b = jax.random.uniform(kb, (1, fan_out), jnp.float32, -bound, bound)
        params.append((w, b))
    return params


def mlp_reference(x, params):
    """Pure-JAX reference matching the kernel's bf16-operand / f32-accum math."""
    h = x.astype(jnp.bfloat16)
    for (w, b) in params[:-1]:
        z = jnp.dot(h, w.astype(jnp.bfloat16),
                    preferred_element_type=jnp.float32) + b
        h = (z * jax.nn.sigmoid(z)).astype(jnp.bfloat16)
    w, b = params[-1]
    return jnp.dot(h, w.astype(jnp.bfloat16),
                   preferred_element_type=jnp.float32) + b


if __name__ == "__main__":
    key = jax.random.PRNGKey(0)
    key, kx = jax.random.split(key)

    B, IN_CH, OUT_CH, HIDDEN = 8, 16, 8, 64
    x = jax.random.normal(kx, (B, IN_CH), jnp.float32)
    params = init_mlp_params(key, IN_CH, OUT_CH, hidden_channels=HIDDEN, n_blocks=5)

    out = jax.block_until_ready(mlp_forward(x, params))
    ref = mlp_reference(x, params)
    assert out.shape == (B, OUT_CH)
    # Tolerance covers bf16 operand rounding + EUP approximate reciprocal.
    assert jnp.allclose(out, ref, atol=2e-2, rtol=2e-2), "mismatch vs reference"

    # Ragged batch + multi-step grid path (exercises row padding and pipelining).
    key, kx2 = jax.random.split(key)
    x2 = jax.random.normal(kx2, (40, IN_CH), jnp.float32)
    out2 = jax.block_until_ready(mlp_forward(x2, params, block_batch=16))
    ref2 = mlp_reference(x2, params)
    assert out2.shape == (40, OUT_CH)
    assert jnp.allclose(out2, ref2, atol=2e-2, rtol=2e-2), "mismatch (tiled) vs reference"

    print("KERNEL_OK")
</pallas_src>

<mosaic_0001>
module attributes {stable_mosaic.version = 11 : i64} {
  func.func @kernel(%arg0: i32, %arg1: memref<16x16xf32, #tpu.memory_space<vmem>>, %arg2: memref<16x64xbf16, #tpu.memory_space<vmem>>, %arg3: memref<1x64xf32, #tpu.memory_space<vmem>>, %arg4: memref<64x64xbf16, #tpu.memory_space<vmem>>, %arg5: memref<1x64xf32, #tpu.memory_space<vmem>>, %arg6: memref<64x64xbf16, #tpu.memory_space<vmem>>, %arg7: memref<1x64xf32, #tpu.memory_space<vmem>>, %arg8: memref<64x64xbf16, #tpu.memory_space<vmem>>, %arg9: memref<1x64xf32, #tpu.memory_space<vmem>>, %arg10: memref<64x8xbf16, #tpu.memory_space<vmem>>, %arg11: memref<1x8xf32, #tpu.memory_space<vmem>>, %arg12: memref<16x8xf32, #tpu.memory_space<vmem>>) attributes {dimension_semantics = [#tpu.dimension_semantics<parallel>], iteration_bounds = array<i64: 1>, scalar_prefetch = 0 : i64, scratch_operands = 0 : i64, tpu.core_type = #tpu.core_type<tc>, window_params = [{transform_indices = @transform_0, window_bounds = array<i64: 16, 16>}, {pipeline_mode = #tpu.pipeline_mode<synchronous>, transform_indices = @transform_1, window_bounds = array<i64: 16, 64>}, {pipeline_mode = #tpu.pipeline_mode<synchronous>, transform_indices = @transform_2, window_bounds = array<i64: 1, 64>}, {pipeline_mode = #tpu.pipeline_mode<synchronous>, transform_indices = @transform_3, window_bounds = array<i64: 64, 64>}, {pipeline_mode = #tpu.pipeline_mode<synchronous>, transform_indices = @transform_4, window_bounds = array<i64: 1, 64>}, {pipeline_mode = #tpu.pipeline_mode<synchronous>, transform_indices = @transform_5, window_bounds = array<i64: 64, 64>}, {pipeline_mode = #tpu.pipeline_mode<synchronous>, transform_indices = @transform_6, window_bounds = array<i64: 1, 64>}, {pipeline_mode = #tpu.pipeline_mode<synchronous>, transform_indices = @transform_7, window_bounds = array<i64: 64, 64>}, {pipeline_mode = #tpu.pipeline_mode<synchronous>, transform_indices = @transform_8, window_bounds = array<i64: 1, 64>}, {pipeline_mode = #tpu.pipeline_mode<synchronous>, transform_indices = @transform_9, window_bounds = array<i64: 64, 8>}, {pipeline_mode = #tpu.pipeline_mode<synchronous>, transform_indices = @transform_10, window_bounds = array<i64: 1, 8>}, {transform_indices = @transform_11, window_bounds = array<i64: 16, 8>}]} {
    %c0 = arith.constant 0 : index
    %c0_0 = arith.constant 0 : index
    %0 = vector.load %arg1[%c0, %c0_0] : memref<16x16xf32, #tpu.memory_space<vmem>>, vector<16x16xf32>
    %1 = arith.truncf %0 : vector<16x16xf32> to vector<16x16xbf16>
    %c0_1 = arith.constant 0 : index
    %c0_2 = arith.constant 0 : index
    %2 = vector.load %arg2[%c0_1, %c0_2] : memref<16x64xbf16, #tpu.memory_space<vmem>>, vector<16x64xbf16>
    %cst = arith.constant dense<0.000000e+00> : vector<16x64xf32>
    %3 = tpu.matmul %1, %2, %cst {dimension_numbers = #tpu.dot_dimension_numbers<[1], [0], [0], [1], [0, 0, 1, 1], [], []>} : vector<16x16xbf16>, vector<16x64xbf16>, vector<16x64xf32> -> vector<16x64xf32>
    %c0_3 = arith.constant 0 : index
    %c0_4 = arith.constant 0 : index
    %4 = vector.load %arg3[%c0_3, %c0_4] : memref<1x64xf32, #tpu.memory_space<vmem>>, vector<1x64xf32>
    %5 = vector.broadcast %4 : vector<1x64xf32> to vector<16x64xf32>
    %6 = arith.addf %3, %5 : vector<16x64xf32>
    %cst_5 = arith.constant 0.000000e+00 : f32
    %7 = vector.broadcast %cst_5 : f32 to vector<16x64xf32>
    %8 = arith.subf %7, %6 : vector<16x64xf32>
    %9 = math.exp %8 : vector<16x64xf32>
    %cst_6 = arith.constant 1.000000e+00 : f32
    %10 = vector.broadcast %cst_6 : f32 to vector<16x64xf32>
    %11 = arith.addf %10, %9 : vector<16x64xf32>
    %12 = tpu.reciprocal %11 {approx = true} : vector<16x64xf32> -> vector<16x64xf32>
    %13 = arith.mulf %6, %12 : vector<16x64xf32>
    %14 = arith.truncf %13 : vector<16x64xf32> to vector<16x64xbf16>
    %c0_7 = arith.constant 0 : index
    %c0_8 = arith.constant 0 : index
    %15 = vector.load %arg4[%c0_7, %c0_8] : memref<64x64xbf16, #tpu.memory_space<vmem>>, vector<64x64xbf16>
    %cst_9 = arith.constant dense<0.000000e+00> : vector<16x64xf32>
    %16 = tpu.matmul %14, %15, %cst_9 {dimension_numbers = #tpu.dot_dimension_numbers<[1], [0], [0], [1], [0, 0, 1, 1], [], []>} : vector<16x64xbf16>, vector<64x64xbf16>, vector<16x64xf32> -> vector<16x64xf32>
    %c0_10 = arith.constant 0 : index
    %c0_11 = arith.constant 0 : index
    %17 = vector.load %arg5[%c0_10, %c0_11] : memref<1x64xf32, #tpu.memory_space<vmem>>, vector<1x64xf32>
    %18 = vector.broadcast %17 : vector<1x64xf32> to vector<16x64xf32>
    %19 = arith.addf %16, %18 : vector<16x64xf32>
    %cst_12 = arith.constant 0.000000e+00 : f32
    %20 = vector.broadcast %cst_12 : f32 to vector<16x64xf32>
    %21 = arith.subf %20, %19 : vector<16x64xf32>
    %22 = math.exp %21 : vector<16x64xf32>
    %cst_13 = arith.constant 1.000000e+00 : f32
    %23 = vector.broadcast %cst_13 : f32 to vector<16x64xf32>
    %24 = arith.addf %23, %22 : vector<16x64xf32>
    %25 = tpu.reciprocal %24 {approx = true} : vector<16x64xf32> -> vector<16x64xf32>
    %26 = arith.mulf %19, %25 : vector<16x64xf32>
    %27 = arith.truncf %26 : vector<16x64xf32> to vector<16x64xbf16>
    %c0_14 = arith.constant 0 : index
    %c0_15 = arith.constant 0 : index
    %28 = vector.load %arg6[%c0_14, %c0_15] : memref<64x64xbf16, #tpu.memory_space<vmem>>, vector<64x64xbf16>
    %cst_16 = arith.constant dense<0.000000e+00> : vector<16x64xf32>
    %29 = tpu.matmul %27, %28, %cst_16 {dimension_numbers = #tpu.dot_dimension_numbers<[1], [0], [0], [1], [0, 0, 1, 1], [], []>} : vector<16x64xbf16>, vector<64x64xbf16>, vector<16x64xf32> -> vector<16x64xf32>
    %c0_17 = arith.constant 0 : index
    %c0_18 = arith.constant 0 : index
    %30 = vector.load %arg7[%c0_17, %c0_18] : memref<1x64xf32, #tpu.memory_space<vmem>>, vector<1x64xf32>
    %31 = vector.broadcast %30 : vector<1x64xf32> to vector<16x64xf32>
    %32 = arith.addf %29, %31 : vector<16x64xf32>
    %cst_19 = arith.constant 0.000000e+00 : f32
    %33 = vector.broadcast %cst_19 : f32 to vector<16x64xf32>
    %34 = arith.subf %33, %32 : vector<16x64xf32>
    %35 = math.exp %34 : vector<16x64xf32>
    %cst_20 = arith.constant 1.000000e+00 : f32
    %36 = vector.broadcast %cst_20 : f32 to vector<16x64xf32>
    %37 = arith.addf %36, %35 : vector<16x64xf32>
    %38 = tpu.reciprocal %37 {approx = true} : vector<16x64xf32> -> vector<16x64xf32>
    %39 = arith.mulf %32, %38 : vector<16x64xf32>
    %40 = arith.truncf %39 : vector<16x64xf32> to vector<16x64xbf16>
    %c0_21 = arith.constant 0 : index
    %c0_22 = arith.constant 0 : index
    %41 = vector.load %arg8[%c0_21, %c0_22] : memref<64x64xbf16, #tpu.memory_space<vmem>>, vector<64x64xbf16>
    %cst_23 = arith.constant dense<0.000000e+00> : vector<16x64xf32>
    %42 = tpu.matmul %40, %41, %cst_23 {dimension_numbers = #tpu.dot_dimension_numbers<[1], [0], [0], [1], [0, 0, 1, 1], [], []>} : vector<16x64xbf16>, vector<64x64xbf16>, vector<16x64xf32> -> vector<16x64xf32>
    %c0_24 = arith.constant 0 : index
    %c0_25 = arith.constant 0 : index
    %43 = vector.load %arg9[%c0_24, %c0_25] : memref<1x64xf32, #tpu.memory_space<vmem>>, vector<1x64xf32>
    %44 = vector.broadcast %43 : vector<1x64xf32> to vector<16x64xf32>
    %45 = arith.addf %42, %44 : vector<16x64xf32>
    %cst_26 = arith.constant 0.000000e+00 : f32
    %46 = vector.broadcast %cst_26 : f32 to vector<16x64xf32>
    %47 = arith.subf %46, %45 : vector<16x64xf32>
    %48 = math.exp %47 : vector<16x64xf32>
    %cst_27 = arith.constant 1.000000e+00 : f32
    %49 = vector.broadcast %cst_27 : f32 to vector<16x64xf32>
    %50 = arith.addf %49, %48 : vector<16x64xf32>
    %51 = tpu.reciprocal %50 {approx = true} : vector<16x64xf32> -> vector<16x64xf32>
    %52 = arith.mulf %45, %51 : vector<16x64xf32>
    %53 = arith.truncf %52 : vector<16x64xf32> to vector<16x64xbf16>
    %c0_28 = arith.constant 0 : index
    %c0_29 = arith.constant 0 : index
    %54 = vector.load %arg10[%c0_28, %c0_29] : memref<64x8xbf16, #tpu.memory_space<vmem>>, vector<64x8xbf16>
    %cst_30 = arith.constant dense<0.000000e+00> : vector<16x8xf32>
    %55 = tpu.matmul %53, %54, %cst_30 {dimension_numbers = #tpu.dot_dimension_numbers<[1], [0], [0], [1], [0, 0, 1, 1], [], []>} : vector<16x64xbf16>, vector<64x8xbf16>, vector<16x8xf32> -> vector<16x8xf32>
    %c0_31 = arith.constant 0 : index
    %c0_32 = arith.constant 0 : index
    %56 = vector.load %arg11[%c0_31, %c0_32] : memref<1x8xf32, #tpu.memory_space<vmem>>, vector<1x8xf32>
    %57 = vector.broadcast %56 : vector<1x8xf32> to vector<16x8xf32>
    %58 = arith.addf %55, %57 : vector<16x8xf32>
    %c0_33 = arith.constant 0 : index
    %c0_34 = arith.constant 0 : index
    %59 = vector.load %arg12[%c0_33, %c0_34] : memref<16x8xf32, #tpu.memory_space<vmem>>, vector<16x8xf32>
    tpu.vector_store %arg12[%c0_33, %c0_34], %58 {strides = array<i32>} : memref<16x8xf32, #tpu.memory_space<vmem>>, vector<16x8xf32>,
    return
  }
  func.func @transform_0(%arg0: i32) -> (i32, i32) {
    %c0_i32 = arith.constant 0 : i32
    %c0_i32_0 = arith.constant 0 : i32
    return %arg0, %c0_i32 : i32, i32
  }
  func.func @transform_1(%arg0: i32) -> (i32, i32) {
    %c0_i32 = arith.constant 0 : i32
    %c0_i32_0 = arith.constant 0 : i32
    %c0_i32_1 = arith.constant 0 : i32
    return %c0_i32, %c0_i32_0 : i32, i32
  }
  func.func @transform_2(%arg0: i32) -> (i32, i32) {
    %c0_i32 = arith.constant 0 : i32
    %c0_i32_0 = arith.constant 0 : i32
    %c0_i32_1 = arith.constant 0 : i32
    return %c0_i32, %c0_i32_0 : i32, i32
  }
  func.func @transform_3(%arg0: i32) -> (i32, i32) {
    %c0_i32 = arith.constant 0 : i32
    %c0_i32_0 = arith.constant 0 : i32
    %c0_i32_1 = arith.constant 0 : i32
    return %c0_i32, %c0_i32_0 : i32, i32
  }
  func.func @transform_4(%arg0: i32) -> (i32, i32) {
    %c0_i32 = arith.constant 0 : i32
    %c0_i32_0 = arith.constant 0 : i32
    %c0_i32_1 = arith.constant 0 : i32
    return %c0_i32, %c0_i32_0 : i32, i32
  }
  func.func @transform_5(%arg0: i32) -> (i32, i32) {
    %c0_i32 = arith.constant 0 : i32
    %c0_i32_0 = arith.constant 0 : i32
    %c0_i32_1 = arith.constant 0 : i32
    return %c0_i32, %c0_i32_0 : i32, i32
  }
  func.func @transform_6(%arg0: i32) -> (i32, i32) {
    %c0_i32 = arith.constant 0 : i32
    %c0_i32_0 = arith.constant 0 : i32
    %c0_i32_1 = arith.constant 0 : i32
    return %c0_i32, %c0_i32_0 : i32, i32
  }
  func.func @transform_7(%arg0: i32) -> (i32, i32) {
    %c0_i32 = arith.constant 0 : i32
    %c0_i32_0 = arith.constant 0 : i32
    %c0_i32_1 = arith.constant 0 : i32
    return %c0_i32, %c0_i32_0 : i32, i32
  }
  func.func @transform_8(%arg0: i32) -> (i32, i32) {
    %c0_i32 = arith.constant 0 : i32
    %c0_i32_0 = arith.constant 0 : i32
    %c0_i32_1 = arith.constant 0 : i32
    return %c0_i32, %c0_i32_0 : i32, i32
  }
  func.func @transform_9(%arg0: i32) -> (i32, i32) {
    %c0_i32 = arith.constant 0 : i32
    %c0_i32_0 = arith.constant 0 : i32
    %c0_i32_1 = arith.constant 0 : i32
    return %c0_i32, %c0_i32_0 : i32, i32
  }
  func.func @transform_10(%arg0: i32) -> (i32, i32) {
    %c0_i32 = arith.constant 0 : i32
    %c0_i32_0 = arith.constant 0 : i32
    %c0_i32_1 = arith.constant 0 : i32
    return %c0_i32, %c0_i32_0 : i32, i32
  }
  func.func @transform_11(%arg0: i32) -> (i32, i32) {
    %c0_i32 = arith.constant 0 : i32
    %c0_i32_0 = arith.constant 0 : i32
    return %arg0, %c0_i32 : i32, i32
  }
}

</mosaic_0001>

<bundles_post_ra>
// kernel: tpu_custom_call.1
= control target key start
LH: loop header
LB: loop body
LE: loop exit
PB: predicated region body
PF: predicated region fallthrough
CT: control target
= control target key end

     0   :  { %16 = vsyncpa [#allocation3], 0  ;;  %s958_s0 = inlined_call_operand.hbm [shape: f32[16,16], index: 0, kind: input, shape index: {}]   ;;  %s959_s1 = inlined_call_operand.vmem [shape: bf16[16,64], index: 1, kind: input, shape index: {}]   ;;  %s960_s2 = inlined_call_operand.vmem [shape: f32[1,64], index: 2, kind: input, shape index: {}]   ;;  %s961_s3 = inlined_call_operand.vmem [shape: bf16[64,64], index: 3, kind: input, shape index: {}]   ;;  %s962_s4 = inlined_call_operand.vmem [shape: f32[1,64], index: 4, kind: input, shape index: {}]   ;;  %s963_s5 = inlined_call_operand.hbm [shape: bf16[64,64], index: 5, kind: input, shape index: {}]   ;;  %s964_s6 = inlined_call_operand.vmem [shape: f32[1,64], index: 6, kind: input, shape index: {}]   ;;  %s965_s7 = inlined_call_operand.hbm [shape: bf16[64,64], index: 7, kind: input, shape index: {}]   ;;  %s966_s8 = inlined_call_operand.vmem [shape: f32[1,64], index: 8, kind: input, shape index: {}]   ;;  %s967_s9 = inlined_call_operand.vmem [shape: bf16[64,8], index: 9, kind: input, shape index: {}]   ;;  %s968_s10 = inlined_call_operand.vmem [shape: f32[1,8], index: 10, kind: input, shape index: {}]   ;;  %s969_s11 = inlined_call_operand.vmem [shape: f32[16,8], index: 11, kind: output, shape index: {}]  }
   0x1   :  { %17 = vsyncpa [#allocation5], 0  ;;  %s768_s17 = smov [#allocation4]   ;;  %s698_s21 = scalar_lea.hbm %s963_s5, 512 }
   0x2   :  { %s43_s18 = sshll.u32 %s768_s17, 4  ;;  %p699_p0 = scmp.ne.s32.totalorder %s963_s5, %s698_s21  ;;  %s44_s18 = int_to_ptr.vmem [resolvable:$true] %s43_s18 }
   0x3   :  { %p702_p1 = scmp.lt.u32.totalorder %s698_s21, %s963_s5 }
   0x5   :  { %p704_p2 = pnand %p702_p1, %p699_p0 }
   0x7   :  { %707 = shalt.err (!%p704_p2)
}
   0x8   :  { %s708_s26 = scalar_lea.vmem %s44_s18, 512  ;;  %p713_p4 = scmp.lt.s32.totalorder %s44_s18, %s44_s18 }
   0x9   :  { %p709_p3 = scmp.ne.s32.totalorder %s44_s18, %s708_s26  ;;  %p714_p5 = scmp.lt.s32.totalorder %s708_s26, %s708_s26 }
   0xb   :  { %p715_p6 = por %p714_p5, %p713_p4 }
   0xd   :  { %p716_p7 = pnand %p715_p6, %p709_p3 }
   0xf   :  { %719 = shalt.err (!%p716_p7)
}
  0x10   :  { %s769_s27 = smov 64   ;;  %s770_s28 = smov 4  }
  0x11   :  { %49 = dma.hbm_to_vmem [thread:$0]  %s963_s5, 512, %s44_s18, [#allocation5], %s769_s27, %s769_s27, %s770_s28  }
  0x12   :  { %s771_s12 = smov [#allocation2]   ;;  %s720_s16 = scalar_lea.hbm %s958_s0, 256 }
  0x13   :  { %s23_s13 = sshll.u32 %s771_s12, 4  ;;  %p721_p8 = scmp.ne.s32.totalorder %s958_s0, %s720_s16  ;;  %s24_s13 = int_to_ptr.vmem [resolvable:$true] %s23_s13 }
  0x14   :  { %p724_p9 = scmp.lt.u32.totalorder %s720_s16, %s958_s0 }
  0x16   :  { %p726_p10 = pnand %p724_p9, %p721_p8 }
  0x18   :  { %729 = shalt.err (!%p726_p10)
}
  0x19   :  { %s730_s22 = scalar_lea.vmem %s24_s13, 256  ;;  %p735_p12 = scmp.lt.s32.totalorder %s24_s13, %s24_s13 }
  0x1a   :  { %p731_p11 = scmp.ne.s32.totalorder %s24_s13, %s730_s22  ;;  %p736_p13 = scmp.lt.s32.totalorder %s730_s22, %s730_s22 }
  0x1c   :  { %p737_p0 = por %p736_p13, %p735_p12 }
  0x1e   :  { %p738_p1 = pnand %p737_p0, %p731_p11 }
  0x20   :  { %741 = shalt.err (!%p738_p1)
}
  0x21   :  { %s772_s5 = smov 128   ;;  %s773_s18 = smov 8  }
  0x22   :  { %29 = dma.hbm_to_vmem [thread:$0]  %s958_s0, 256, %s24_s13, [#allocation3], %s772_s5, %s772_s5, %s773_s18  }
  0x23   :  { %s774_s25 = smov [#allocation6]   ;;  %s742_s12 = scalar_lea.hbm %s965_s7, 512 }
  0x24   :  { %s57_s26 = sshll.u32 %s774_s25, 4  ;;  %p743_p2 = scmp.ne.s32.totalorder %s965_s7, %s742_s12  ;;  %s58_s26 = int_to_ptr.vmem [resolvable:$true] %s57_s26 }
  0x25   :  { %p746_p3 = scmp.lt.u32.totalorder %s742_s12, %s965_s7 }
  0x27   :  { %p748_p4 = pnand %p746_p3, %p743_p2 }
  0x29   :  { %751 = shalt.err (!%p748_p4)
}
  0x2a   :  { %s752_s19 = scalar_lea.vmem %s58_s26, 512  ;;  %p757_p6 = scmp.lt.s32.totalorder %s58_s26, %s58_s26 }
  0x2b   :  { %p753_p5 = scmp.ne.s32.totalorder %s58_s26, %s752_s19  ;;  %p758_p7 = scmp.lt.s32.totalorder %s752_s19, %s752_s19 }
  0x2d   :  { %p759_p8 = por %p758_p7, %p757_p6 }
  0x2f   :  { %p760_p9 = pnand %p759_p8, %p753_p5 }
  0x31   :  { %763 = shalt.err (!%p760_p9)
}
  0x32   :  { %63 = dma.hbm_to_vmem [thread:$0]  %s965_s7, 512, %s58_s26, [#allocation5], %s769_s27, %s769_s27, %s770_s28  }
  0x33   :  { %764 = dma.done.wait [#allocation3], 256  }
  0x34   :  { %765 = vsyncadd [#allocation3], 4294967040 }
  0x35   :  { %766 = dma.done.wait [#allocation5], 1024  }
  0x36   :  { %767 = vsyncadd [#allocation5], 4294966272  ;;  %v775_v0 = vmov 0.0   ;;  %vm776_vm0 = vmmov 0   ;;  %v649_v1 = vld [vmem:[%s959_s1] sm:$0xff]   ;;  %v81_v3 = vld [vmem:[#allocation2 + $0x8] sm:$0xff] }
  0x37   :  { %586 = vmatprep.subr.bf16.mxu0 %v775_v0  ;;  %588 = vmatprep.mubr.msk.bf16.mxu0 %vm776_vm0, %v775_v0  ;;  %v80_v2 = vld [vmem:[#allocation2] sm:$0xff]  ;;  %vm98_vm1 = vcmask 130048   ;;  %v651_v6 = vld [vmem:[%s961_s3 + $0x8] sm:$0xff]   ;;  %v652_v7 = vld [vmem:[%s961_s3 + $0x10] sm:$0xff]   ;;  %vm195_vm2 = vcmask 523264   ;;  %vm528_vm3 = vcmask 64512  }
  0x38   :  { %592 = vmatprep.subr.bf16.mxu1 %v775_v0  ;;  %600 = vmatprep.mubr.msk.bf16.mxu1 %vm776_vm0, %v775_v0  ;;  %v82_v4 = vpack.c.bf16 %v81_v3, %v80_v2  ;;  %v650_v5 = vld [vmem:[%s961_s3] sm:$0xff]   ;;  %v653_v8 = vld [vmem:[%s961_s3 + $0x18] sm:$0xff]   ;;  %v654_v29 = vld [vmem:[#allocation4] sm:$0xff]  }
  0x39   :  { %587 = vmatpush3.bf16.msra.mxu0 %v649_v1  ;;  %593 = vmatpush3.bf16.msra.mxu1 %v650_v5  ;;  %v537_v9 = vld [vmem:[%s960_s2] ss:$0 sm:$0xff]  ;;  %v655_v30 = vld [vmem:[#allocation4 + $0x8] sm:$0xff]   ;;  %v657_v32 = vld [vmem:[#allocation4 + $0x18] sm:$0xff]  }
  0x3a   :  { %604 = vmatprep.subr.bf16.mxu0 %v775_v0  ;;  %594 = vmatprep.subr.bf16.mxu1 %v775_v0  ;;  %v656_v31 = vld [vmem:[#allocation4 + $0x10] sm:$0xff]   ;;  %v658_v53 = vld [vmem:[#allocation6] sm:$0xff]   ;;  %v659_v54 = vld [vmem:[#allocation6 + $0x8] sm:$0xff]  }
  0x3b   :  { %v540_v33 = vld [vmem:[%s962_s4] ss:$0 sm:$0xff]  ;;  %v661_v56 = vld [vmem:[#allocation6 + $0x18] sm:$0xff]  }
  0x3c   :  { %589 = vmatmul.mubr.msk.bf16.vlgmr.msra.gmra.mrb[0].mxu0 %vm98_vm1, %v82_v4  ;;  %v660_v55 = vld [vmem:[#allocation6 + $0x10] sm:$0xff]  }
  0x3d   :  { %612 = vmatprep.mubr.msk.bf16.mxu0 %vm776_vm0, %v775_v0  ;;  %595 = vmatpush3.bf16.msra.mxu1 %v651_v6  ;;  %v546_v57 = vld [vmem:[%s964_s6] ss:$0 sm:$0xff] }
  0x3e   :  { %596 = vmatprep.subr.bf16.mxu1 %v775_v0  ;;  %605 = vmatpush3.bf16.msra.mxu0 %v654_v29 }
  0x3f   :  { %606 = vmatprep.subr.bf16.mxu0 %v775_v0 }
  0x41   :  { %597 = vmatpush3.bf16.msra.mxu1 %v652_v7 }
  0x42   :  { %598 = vmatprep.subr.bf16.mxu1 %v775_v0  ;;  %607 = vmatpush3.bf16.msra.mxu0 %v655_v30 }
  0x43   :  { %608 = vmatprep.subr.bf16.mxu0 %v775_v0 }
  0x45   :  { %599 = vmatpush3.bf16.msra.mxu1 %v653_v8 }
  0x46   :  { %616 = vmatprep.subr.bf16.mxu1 %v775_v0  ;;  %609 = vmatpush3.bf16.msra.mxu0 %v656_v31 }
  0x47   :  { %610 = vmatprep.subr.bf16.mxu0 %v775_v0 }
  0x4a   :  { %611 = vmatpush3.bf16.msra.mxu0 %v657_v32 }
  0x4b   :  { %628 = vmatprep.subr.bf16.mxu0 %v775_v0 }
 0x10f   :  { %v136_v10 = vpop.f32.mrb[0].mxu0 }
 0x110   :  { %v137_v11 = vadd.f32 %v537_v9, %v136_v10  ;;  %v590_v12 = vpop.f32.mrb[1].mxu0 }
 0x111   :  { %v139_v13 = vpop.f32.mrb[2].mxu0 }
 0x112   :  { %v143_v14 = vsub.f32 0.0, %v137_v11  ;;  %v140_v15 = vadd.f32 %v537_v9, %v139_v13  ;;  %v591_v16 = vpop.f32.mrb[3].mxu0 }
 0x113   :  { %v664_v16 = vld [vmem:[%s967_s9 + $0x10] sm:$0xff]  }
 0x114   :  { %v145_v17 = vmul.f32 1.442695, %v143_v14  ;;  %v144_v18 = vsub.f32 0.0, %v140_v15  ;;  %v662_v14 = vld [vmem:[%s967_s9] sm:$0xff]  }
 0x116   :  { %666 = vpow2.f32 %v145_v17  ;;  %v147_v19 = vmul.f32 1.442695, %v144_v18  ;;  %v665_v17 = vld [vmem:[%s967_s9 + $0x18] sm:$0xff]   ;;  %v552_v18 = vld [vmem:[%s966_s8] ss:$0 sm:$0xff] }
 0x118   :  { %668 = vpow2.f32 %v147_v19 }
 0x120   :  { %v667_v20 = vpop.eup %666 }
 0x121   :  { %v149_v21 = vadd.f32 1.0, %v667_v20 }
 0x122   :  { %v669_v22 = vpop.eup %668 }
 0x123   :  { %670 = vrcp.f32 %v149_v21  ;;  %v150_v23 = vadd.f32 1.0, %v669_v22 }
 0x125   :  { %672 = vrcp.f32 %v150_v23 }
 0x12d   :  { %v671_v24 = vpop.eup %670 }
 0x12e   :  { %v153_v26 = vmul.f32 %v671_v24, %v137_v11 }
 0x12f   :  { %v673_v25 = vpop.eup %672 }
 0x130   :  { %v154_v27 = vmul.f32 %v673_v25, %v140_v15  ;;  %v663_v15 = vld [vmem:[%s967_s9 + $0x8] sm:$0xff]  }
 0x132   :  { %v155_v28 = vpack.c.bf16 %v154_v27, %v153_v26 }
 0x134   :  { %601 = vmatmul.mubr.msk.bf16.vlgmr.msra.gmra.mrb[0].mxu1 %vm195_vm2, %v155_v28 }
 0x135   :  { %624 = vmatprep.mubr.msk.bf16.mxu1 %vm776_vm0, %v775_v0  ;;  %617 = vmatpush3.bf16.msra.mxu1 %v658_v53 }
 0x136   :  { %618 = vmatprep.subr.bf16.mxu1 %v775_v0 }
 0x139   :  { %619 = vmatpush3.bf16.msra.mxu1 %v659_v54 }
 0x13a   :  { %620 = vmatprep.subr.bf16.mxu1 %v775_v0 }
 0x13d   :  { %621 = vmatpush3.bf16.msra.mxu1 %v660_v55 }
 0x13e   :  { %622 = vmatprep.subr.bf16.mxu1 %v775_v0 }
 0x141   :  { %623 = vmatpush3.bf16.msra.mxu1 %v661_v56 }
 0x207   :  { %v233_v34 = vpop.f32.mrb[0].mxu1 }
 0x208   :  { %v234_v35 = vadd.f32 %v540_v33, %v233_v34  ;;  %v602_v36 = vpop.f32.mrb[1].mxu1 }
 0x209   :  { %v236_v37 = vpop.f32.mrb[2].mxu1 }
 0x20a   :  { %v240_v38 = vsub.f32 0.0, %v234_v35  ;;  %v237_v39 = vadd.f32 %v540_v33, %v236_v37  ;;  %v603_v40 = vpop.f32.mrb[3].mxu1  ;;  %v558_v37 = vld [vmem:[%s968_s10] ss:$0 sm:$0xff] }
 0x20c   :  { %v242_v41 = vmul.f32 1.442695, %v240_v38  ;;  %v241_v42 = vsub.f32 0.0, %v237_v39 }
 0x20e   :  { %674 = vpow2.f32 %v242_v41  ;;  %v244_v43 = vmul.f32 1.442695, %v241_v42 }
 0x210   :  { %676 = vpow2.f32 %v244_v43 }
 0x218   :  { %v675_v44 = vpop.eup %674 }
 0x219   :  { %v246_v45 = vadd.f32 1.0, %v675_v44 }
 0x21a   :  { %v677_v46 = vpop.eup %676 }
 0x21b   :  { %678 = vrcp.f32 %v246_v45  ;;  %v247_v47 = vadd.f32 1.0, %v677_v46 }
 0x21d   :  { %680 = vrcp.f32 %v247_v47 }
 0x225   :  { %v679_v48 = vpop.eup %678 }
 0x226   :  { %v250_v50 = vmul.f32 %v679_v48, %v234_v35 }
 0x227   :  { %v681_v49 = vpop.eup %680 }
 0x228   :  { %v251_v51 = vmul.f32 %v681_v49, %v237_v39 }
 0x22a   :  { %v252_v52 = vpack.c.bf16 %v251_v51, %v250_v50 }
 0x22c   :  { %613 = vmatmul.mubr.msk.bf16.vlgmr.msra.gmra.mrb[4].mxu0 %vm195_vm2, %v252_v52 }
 0x22d   :  { %636 = vmatprep.mubr.msk.bf16.mxu0 %vm776_vm0, %v775_v0  ;;  %629 = vmatpush3.bf16.msra.mxu0 %v662_v14 }
 0x22e   :  { %630 = vmatprep.subr.bf16.mxu0 %v775_v0 }
 0x231   :  { %631 = vmatpush3.bf16.msra.mxu0 %v663_v15 }
 0x232   :  { %632 = vmatprep.subr.bf16.mxu0 %v775_v0 }
 0x235   :  { %633 = vmatpush3.bf16.msra.mxu0 %v664_v16 }
 0x236   :  { %634 = vmatprep.subr.bf16.mxu0 %v775_v0 }
 0x239   :  { %635 = vmatpush3.bf16.msra.mxu0 %v665_v17 }
 0x2ff   :  { %v329_v58 = vpop.f32.mrb[4].mxu0 }
 0x300   :  { %v330_v59 = vadd.f32 %v546_v57, %v329_v58  ;;  %v614_v60 = vpop.f32.mrb[5].mxu0 }
 0x301   :  { %v332_v61 = vpop.f32.mrb[6].mxu0 }
 0x302   :  { %v336_v62 = vsub.f32 0.0, %v330_v59  ;;  %v333_v63 = vadd.f32 %v546_v57, %v332_v61  ;;  %v615_v1 = vpop.f32.mrb[7].mxu0 }
 0x304   :  { %v338_v2 = vmul.f32 1.442695, %v336_v62  ;;  %v337_v3 = vsub.f32 0.0, %v333_v63 }
 0x306   :  { %682 = vpow2.f32 %v338_v2  ;;  %v340_v4 = vmul.f32 1.442695, %v337_v3 }
 0x308   :  { %684 = vpow2.f32 %v340_v4 }
 0x310   :  { %v683_v5 = vpop.eup %682 }
 0x311   :  { %v342_v6 = vadd.f32 1.0, %v683_v5 }
 0x312   :  { %v685_v7 = vpop.eup %684 }
 0x313   :  { %686 = vrcp.f32 %v342_v6  ;;  %v343_v8 = vadd.f32 1.0, %v685_v7 }
 0x315   :  { %688 = vrcp.f32 %v343_v8 }
 0x31d   :  { %v687_v9 = vpop.eup %686 }
 0x31e   :  { %v346_v11 = vmul.f32 %v687_v9, %v330_v59 }
 0x31f   :  { %v689_v10 = vpop.eup %688 }
 0x320   :  { %v347_v12 = vmul.f32 %v689_v10, %v333_v63 }
 0x322   :  { %v348_v13 = vpack.c.bf16 %v347_v12, %v346_v11 }
 0x324   :  { %625 = vmatmul.mubr.msk.bf16.vlgmr.msra.gmra.mrb[4].mxu1 %vm195_vm2, %v348_v13 }
 0x3f7   :  { %v425_v19 = vpop.f32.mrb[4].mxu1 }
 0x3f8   :  { %v426_v20 = vadd.f32 %v552_v18, %v425_v19  ;;  %v626_v21 = vpop.f32.mrb[5].mxu1 }
 0x3f9   :  { %v428_v22 = vpop.f32.mrb[6].mxu1 }
 0x3fa   :  { %v432_v23 = vsub.f32 0.0, %v426_v20  ;;  %v429_v24 = vadd.f32 %v552_v18, %v428_v22  ;;  %v627_v25 = vpop.f32.mrb[7].mxu1 }
 0x3fc   :  { %v434_v26 = vmul.f32 1.442695, %v432_v23  ;;  %v433_v27 = vsub.f32 0.0, %v429_v24 }
 0x3fe   :  { %690 = vpow2.f32 %v434_v26  ;;  %v436_v0 = vmul.f32 1.442695, %v433_v27 }
 0x400   :  { %692 = vpow2.f32 %v436_v0 }
 0x408   :  { %v691_v28 = vpop.eup %690 }
 0x409   :  { %v438_v29 = vadd.f32 1.0, %v691_v28 }
 0x40a   :  { %v693_v30 = vpop.eup %692 }
 0x40b   :  { %694 = vrcp.f32 %v438_v29  ;;  %v439_v31 = vadd.f32 1.0, %v693_v30 }
 0x40d   :  { %696 = vrcp.f32 %v439_v31 }
 0x415   :  { %v695_v32 = vpop.eup %694 }
 0x416   :  { %v442_v34 = vmul.f32 %v695_v32, %v426_v20 }
 0x417   :  { %v697_v33 = vpop.eup %696 }
 0x418   :  { %v443_v35 = vmul.f32 %v697_v33, %v429_v24 }
 0x41a   :  { %v444_v36 = vpack.c.bf16 %v443_v35, %v442_v34 }
 0x41c   :  { %637 = vmatmul.mubr.msk.bf16.vlgmr.msra.gmra.mrb[8].mxu0 %vm195_vm2, %v444_v36 }
 0x4ef   :  { %v521_v38 = vpop.f32.mrb[8].mxu0 }
 0x4f0   :  { %v522_v39 = vadd.f32 %v558_v37, %v521_v38  ;;  %v638_v40 = vpop.f32.mrb[9].mxu0 }
 0x4f1   :  { %v524_v41 = vpop.f32.mrb[10].mxu0 }
 0x4f2   :  { %529 = vst.msk [vmem:[%s969_s11] sm:$0xff] %vm528_vm3, %v522_v39  ;;  %v525_v42 = vadd.f32 %v558_v37, %v524_v41  ;;  %v639_v43 = vpop.f32.mrb[11].mxu0 }
 0x4f4   :  { %530 = vst.msk [vmem:[%s969_s11 + $0x8] sm:$0xff] %vm528_vm3, %v525_v42 }
 0x4f5   :  { %535 = vsyncpa [#allocation3], 1 }
 0x4f6   :  { %536 = vsyncpa [#allocation5], 1 }

</bundles_post_ra>
